<compile_context>
chip_gen: v7x
topology: tpu7x:2x2x1
jax: 0.10.0
libtpu: 0.0.40
codegen_flags: <defaults>
</compile_context>

<pallas_src>
import numpy as np

import jax
import jax.numpy as jnp
from jax.experimental import pallas as pl
from jax.experimental.pallas import tpu as pltpu  # noqa: F401  (kept for parity / future tuning)

K = 7  # every conv in the module uses kernel_size=7


# ------------------------------------------------------------------ wrapper-side folding

def _sel_matrices(l_out, l_in, stride, pad, transposed):
    """Stacked 0/1 selection matrices S (K, l_out, l_in): S[t] picks, for kernel tap t,
    which input row each output position reads.  Zero-padding, stride and (for
    transpose convs) input dilation / output_padding are folded into the index
    condition; out-of-range rows are all-zero (== zero padding).  Pure numpy (static)."""
    lo = np.arange(l_out, dtype=np.int64)[None, :, None]
    li = np.arange(l_in, dtype=np.int64)[None, None, :]
    t = np.arange(K, dtype=np.int64)[:, None, None]
    if transposed:
        # ConvTranspose1d viewed as a stride-1 conv over the stride-dilated,
        # (K-1-pad)-left-padded input with a flipped kernel.
        cond = (lo + (t - (K - 1 - pad))) == stride * li
    else:
        cond = li == stride * lo + (t - pad)
    return cond.astype(np.float32)


def _fold_layer(w_torch, b, l_in, l_out, stride, pad, transposed):
    """Build the kron-folded dense operator M (l_in*c_in, l_out*c_out) and flattened
    bias row (1, l_out*c_out) so the kernel runs the whole layer as one matmul."""
    if transposed:
        # torch ConvTranspose1d weight (c_in, c_out, K) -> tap-major (K, c_in, c_out),
        # flipped along taps (transpose-conv == conv with flipped kernel).
        w_kic = jnp.flip(jnp.transpose(w_torch, (2, 0, 1)), axis=0)
    else:
        # torch Conv1d weight (c_out, c_in, K) -> tap-major (K, c_in, c_out).
        w_kic = jnp.transpose(w_torch, (2, 1, 0))
    c_in, c_out = w_kic.shape[1], w_kic.shape[2]
    s = jnp.asarray(_sel_matrices(l_out, l_in, stride, pad, transposed))  # (K, l_out, l_in)
    # M[(li,ci),(lo,co)] = sum_t S[t,lo,li] * W[t,ci,co]
    m = jnp.einsum("tol,tcd->lcod", s, w_kic).reshape(l_in * c_in, l_out * c_out)
    bias = jnp.tile(b, l_out).reshape(1, l_out * c_out)
    return m.astype(jnp.float32), bias.astype(jnp.float32)


# ------------------------------------------------------------------ kernel

def _convae_kernel(x_ref, m1, b1, m2, b2, m3, b3, m4, b4, m5, b5, o_ref):
    # Single invocation: batch on sublanes, flattened (length*channels) on lanes.
    # Five MXU matmuls back-to-back; activations never leave vregs/VMEM.
    h = x_ref[...]                                        # (N, l_in*c_in)
    layers = ((m1, b1), (m2, b2), (m3, b3), (m4, b4), (m5, b5))
    for i, (m_ref, b_ref) in enumerate(layers):
        h = jnp.dot(h, m_ref[...], preferred_element_type=jnp.float32) + b_ref[...]
        if i < len(layers) - 1:
            h = jnp.maximum(h, 0.0)                       # ReLU on all but the last layer
    o_ref[...] = h                                        # (N, l5*c_out)


# ------------------------------------------------------------------ wrapper

def conv_autoencoder_forward(params, x):
    n, c_in, l_in = x.shape

    # Static layer geometry (PyTorch Conv1d / ConvTranspose1d output-length formulas;
    # the stride-2 transpose layers have output_padding=1 -> trailing +1).
    l1 = (l_in + 2 * 3 - K) // 2 + 1
    l2 = (l1 + 2 * 3 - K) // 2 + 1
    l3 = (l2 - 1) * 2 - 2 * 3 + K + 1
    l4 = (l3 - 1) * 2 - 2 * 3 + K + 1
    l5 = (l4 - 1) * 1 - 2 * 3 + K

    folded = (
        _fold_layer(params["w1"], params["b1"], l_in, l1, 2, 3, False),   # Conv1d(1->32)
        _fold_layer(params["w2"], params["b2"], l1, l2, 2, 3, False),     # Conv1d(32->16)
        _fold_layer(params["w3"], params["b3"], l2, l3, 2, 3, True),      # ConvT(16->16)
        _fold_layer(params["w4"], params["b4"], l3, l4, 2, 3, True),      # ConvT(16->32)
        _fold_layer(params["w5"], params["b5"], l4, l5, 1, 3, True),      # ConvT(32->1)
    )

    # Lane-dense batched input: one (l_in*c_in) row per batch element, flatten order
    # (length, channel) to match the operators' row ordering.
    x_flat = jnp.transpose(x, (0, 2, 1)).reshape(n, l_in * c_in).astype(jnp.float32)

    operands = [x_flat]
    for m, b in folded:
        operands += [m, b]

    # No grid: single step, whole arrays VMEM-resident (total < 0.5 MB).
    out_flat = pl.pallas_call(
        _convae_kernel,
        out_shape=jax.ShapeDtypeStruct((n, l5 * c_in), jnp.float32),
    )(*operands)

    # (N, l5*c_out) -> PyTorch NCL (N, C, L); final channel count equals input channels.
    return jnp.transpose(out_flat.reshape(n, l5, c_in), (0, 2, 1))


# ------------------------------------------------------------------ params

def init_params(key):
    def u(k, shape, fan_in):
        bound = 1.0 / jnp.sqrt(jnp.float32(fan_in))
        return jax.random.uniform(k, shape, jnp.float32, -bound, bound)

    ks = jax.random.split(key, 10)
    p = {}
    # conv1: Conv1d(1, 32, k=7)
    p["w1"], p["b1"] = u(ks[0], (32, 1, 7), 1 * 7), u(ks[1], (32,), 1 * 7)
    # conv2: Conv1d(32, 16, k=7)
    p["w2"], p["b2"] = u(ks[2], (16, 32, 7), 32 * 7), u(ks[3], (16,), 32 * 7)
    # conv_transpose1: ConvTranspose1d(16, 16, k=7)
    p["w3"], p["b3"] = u(ks[4], (16, 16, 7), 16 * 7), u(ks[5], (16,), 16 * 7)
    # conv_transpose2: ConvTranspose1d(16, 32, k=7)
    p["w4"], p["b4"] = u(ks[6], (16, 32, 7), 32 * 7), u(ks[7], (32,), 32 * 7)
    # conv_transpose3: ConvTranspose1d(32, 1, k=7)
    p["w5"], p["b5"] = u(ks[8], (32, 1, 7), 32 * 7), u(ks[9], (1,), 32 * 7)
    return p


# ------------------------------------------------------------------ pure-JAX reference

def _ref_conv(x, w, b, stride, pad, lhs_dil=1):
    y = jax.lax.conv_general_dilated(
        x, w, window_strides=(stride,), padding=[pad], lhs_dilation=(lhs_dil,),
        dimension_numbers=("NCH", "OIH", "NCH"))
    return y + b[None, :, None]


def reference_forward(p, x):
    h = jax.nn.relu(_ref_conv(x, p["w1"], p["b1"], 2, (3, 3)))
    h = jax.nn.relu(_ref_conv(h, p["w2"], p["b2"], 2, (3, 3)))
    w3 = jnp.flip(jnp.transpose(p["w3"], (1, 0, 2)), axis=2)
    h = jax.nn.relu(_ref_conv(h, w3, p["b3"], 1, (3, 4), lhs_dil=2))   # output_padding=1
    w4 = jnp.flip(jnp.transpose(p["w4"], (1, 0, 2)), axis=2)
    h = jax.nn.relu(_ref_conv(h, w4, p["b4"], 1, (3, 4), lhs_dil=2))   # output_padding=1
    w5 = jnp.flip(jnp.transpose(p["w5"], (1, 0, 2)), axis=2)
    h = _ref_conv(h, w5, p["b5"], 1, (3, 3), lhs_dil=1)
    return h


# ------------------------------------------------------------------ main

if __name__ == "__main__":
    key = jax.random.PRNGKey(0)
    pkey, xkey = jax.random.split(key)
    params = init_params(pkey)

    # input_shape = (1, 16) -> (batch=2, channels=1, length=16)
    x = jax.random.normal(xkey, (2, 1, 16), jnp.float32)

    fwd = jax.jit(conv_autoencoder_forward)
    out = jax.block_until_ready(fwd(params, x))
    assert out.shape == (2, 1, 16), out.shape

    ref = jax.block_until_ready(reference_forward(params, x))
    err = float(jnp.max(jnp.abs(out - ref)))
    assert jnp.allclose(out, ref, atol=1e-3, rtol=1e-3), err

    print("KERNEL_OK")
</pallas_src>

<mosaic_0001>
module attributes {stable_mosaic.version = 11 : i64} {
  func.func @_convae_kernel(%arg0: memref<2x16xf32, #tpu.memory_space<vmem>>, %arg1: memref<16x256xf32, #tpu.memory_space<vmem>>, %arg2: memref<1x256xf32, #tpu.memory_space<vmem>>, %arg3: memref<256x64xf32, #tpu.memory_space<vmem>>, %arg4: memref<1x64xf32, #tpu.memory_space<vmem>>, %arg5: memref<64x128xf32, #tpu.memory_space<vmem>>, %arg6: memref<1x128xf32, #tpu.memory_space<vmem>>, %arg7: memref<128x512xf32, #tpu.memory_space<vmem>>, %arg8: memref<1x512xf32, #tpu.memory_space<vmem>>, %arg9: memref<512x16xf32, #tpu.memory_space<vmem>>, %arg10: memref<1x16xf32, #tpu.memory_space<vmem>>, %arg11: memref<2x16xf32, #tpu.memory_space<vmem>>) attributes {dimension_semantics = [], scalar_prefetch = 0 : i64, scratch_operands = 0 : i64, tpu.core_type = #tpu.core_type<tc>} {
    %c0 = arith.constant 0 : index
    %c0_0 = arith.constant 0 : index
    %0 = vector.load %arg0[%c0, %c0_0] : memref<2x16xf32, #tpu.memory_space<vmem>>, vector<2x16xf32>
    %c0_1 = arith.constant 0 : index
    %c0_2 = arith.constant 0 : index
    %1 = vector.load %arg1[%c0_1, %c0_2] : memref<16x256xf32, #tpu.memory_space<vmem>>, vector<16x256xf32>
    %cst = arith.constant dense<0.000000e+00> : vector<2x256xf32>
    %2 = tpu.matmul %0, %1, %cst {dimension_numbers = #tpu.dot_dimension_numbers<[1], [0], [0], [1], [0, 0, 1, 1], [], []>} : vector<2x16xf32>, vector<16x256xf32>, vector<2x256xf32> -> vector<2x256xf32>
    %c0_3 = arith.constant 0 : index
    %c0_4 = arith.constant 0 : index
    %3 = vector.load %arg2[%c0_3, %c0_4] : memref<1x256xf32, #tpu.memory_space<vmem>>, vector<1x256xf32>
    %4 = vector.broadcast %3 : vector<1x256xf32> to vector<2x256xf32>
    %5 = arith.addf %2, %4 : vector<2x256xf32>
    %cst_5 = arith.constant 0.000000e+00 : f32
    %6 = vector.broadcast %cst_5 : f32 to vector<2x256xf32>
    %7 = arith.maximumf %5, %6 : vector<2x256xf32>
    %c0_6 = arith.constant 0 : index
    %c0_7 = arith.constant 0 : index
    %8 = vector.load %arg3[%c0_6, %c0_7] : memref<256x64xf32, #tpu.memory_space<vmem>>, vector<256x64xf32>
    %cst_8 = arith.constant dense<0.000000e+00> : vector<2x64xf32>
    %9 = tpu.matmul %7, %8, %cst_8 {dimension_numbers = #tpu.dot_dimension_numbers<[1], [0], [0], [1], [0, 0, 1, 1], [], []>} : vector<2x256xf32>, vector<256x64xf32>, vector<2x64xf32> -> vector<2x64xf32>
    %c0_9 = arith.constant 0 : index
    %c0_10 = arith.constant 0 : index
    %10 = vector.load %arg4[%c0_9, %c0_10] : memref<1x64xf32, #tpu.memory_space<vmem>>, vector<1x64xf32>
    %11 = vector.broadcast %10 : vector<1x64xf32> to vector<2x64xf32>
    %12 = arith.addf %9, %11 : vector<2x64xf32>
    %cst_11 = arith.constant 0.000000e+00 : f32
    %13 = vector.broadcast %cst_11 : f32 to vector<2x64xf32>
    %14 = arith.maximumf %12, %13 : vector<2x64xf32>
    %c0_12 = arith.constant 0 : index
    %c0_13 = arith.constant 0 : index
    %15 = vector.load %arg5[%c0_12, %c0_13] : memref<64x128xf32, #tpu.memory_space<vmem>>, vector<64x128xf32>
    %cst_14 = arith.constant dense<0.000000e+00> : vector<2x128xf32>
    %16 = tpu.matmul %14, %15, %cst_14 {dimension_numbers = #tpu.dot_dimension_numbers<[1], [0], [0], [1], [0, 0, 1, 1], [], []>} : vector<2x64xf32>, vector<64x128xf32>, vector<2x128xf32> -> vector<2x128xf32>
    %c0_15 = arith.constant 0 : index
    %c0_16 = arith.constant 0 : index
    %17 = vector.load %arg6[%c0_15, %c0_16] : memref<1x128xf32, #tpu.memory_space<vmem>>, vector<1x128xf32>
    %18 = vector.broadcast %17 : vector<1x128xf32> to vector<2x128xf32>
    %19 = arith.addf %16, %18 : vector<2x128xf32>
    %cst_17 = arith.constant 0.000000e+00 : f32
    %20 = vector.broadcast %cst_17 : f32 to vector<2x128xf32>
    %21 = arith.maximumf %19, %20 : vector<2x128xf32>
    %c0_18 = arith.constant 0 : index
    %c0_19 = arith.constant 0 : index
    %22 = vector.load %arg7[%c0_18, %c0_19] : memref<128x512xf32, #tpu.memory_space<vmem>>, vector<128x512xf32>
    %cst_20 = arith.constant dense<0.000000e+00> : vector<2x512xf32>
    %23 = tpu.matmul %21, %22, %cst_20 {dimension_numbers = #tpu.dot_dimension_numbers<[1], [0], [0], [1], [0, 0, 1, 1], [], []>} : vector<2x128xf32>, vector<128x512xf32>, vector<2x512xf32> -> vector<2x512xf32>
    %c0_21 = arith.constant 0 : index
    %c0_22 = arith.constant 0 : index
    %24 = vector.load %arg8[%c0_21, %c0_22] : memref<1x512xf32, #tpu.memory_space<vmem>>, vector<1x512xf32>
    %25 = vector.broadcast %24 : vector<1x512xf32> to vector<2x512xf32>
    %26 = arith.addf %23, %25 : vector<2x512xf32>
    %cst_23 = arith.constant 0.000000e+00 : f32
    %27 = vector.broadcast %cst_23 : f32 to vector<2x512xf32>
    %28 = arith.maximumf %26, %27 : vector<2x512xf32>
    %c0_24 = arith.constant 0 : index
    %c0_25 = arith.constant 0 : index
    %29 = vector.load %arg9[%c0_24, %c0_25] : memref<512x16xf32, #tpu.memory_space<vmem>>, vector<512x16xf32>
    %cst_26 = arith.constant dense<0.000000e+00> : vector<2x16xf32>
    %30 = tpu.matmul %28, %29, %cst_26 {dimension_numbers = #tpu.dot_dimension_numbers<[1], [0], [0], [1], [0, 0, 1, 1], [], []>} : vector<2x512xf32>, vector<512x16xf32>, vector<2x16xf32> -> vector<2x16xf32>
    %c0_27 = arith.constant 0 : index
    %c0_28 = arith.constant 0 : index
    %31 = vector.load %arg10[%c0_27, %c0_28] : memref<1x16xf32, #tpu.memory_space<vmem>>, vector<1x16xf32>
    %32 = vector.broadcast %31 : vector<1x16xf32> to vector<2x16xf32>
    %33 = arith.addf %30, %32 : vector<2x16xf32>
    %c0_29 = arith.constant 0 : index
    %c0_30 = arith.constant 0 : index
    %34 = vector.load %arg11[%c0_29, %c0_30] : memref<2x16xf32, #tpu.memory_space<vmem>>, vector<2x16xf32>
    tpu.vector_store %arg11[%c0_29, %c0_30], %33 {strides = array<i32>} : memref<2x16xf32, #tpu.memory_space<vmem>>, vector<2x16xf32>,
    return
  }
}

</mosaic_0001>

<bundles_post_ra>
// kernel: tile.43
= control target key start
LH: loop header
LB: loop body
LE: loop exit
PB: predicated region body
PF: predicated region fallthrough
CT: control target
= control target key end

     0   :  { %s28_s0 = inlined_call_operand.vmem [shape: f32[32], index: 0, kind: input, shape index: {}]   ;;  %s29_s1 = inlined_call_operand.vmem [shape: f32[16,32], index: 1, kind: output, shape index: {}]  }
   0x1   :  { %v4_v0 = vld [vmem:[%s28_s0] ss:$0 sm:$0xff] }
   0x2   :  { %5 = vst [vmem:[%s29_s1] sm:$0xff] %v4_v0  ;;  %8 = vst [vmem:[%s29_s1 + $0x8] sm:$0xff] %v4_v0 }

// kernel: tile.44
= control target key start
LH: loop header
LB: loop body
LE: loop exit
PB: predicated region body
PF: predicated region fallthrough
CT: control target
= control target key end

     0   :  { %s57_s8 = smov 96   ;;  %vm3_vm0 = vcmask 261120   ;;  %s59_s15 = smov 64   ;;  %vm9_vm1 = vcmask 1048320   ;;  %vm15_vm2 = vcmask 785920   ;;  %vm21_vm3 = vcmask 523520   ;;  %s94_s0 = inlined_call_operand.vmem [shape: f32[16,32], index: 0, kind: input, shape index: {}]   ;;  %s95_s1 = inlined_call_operand.vmem [shape: f32[1,512], index: 1, kind: output, shape index: {}]  }
   0x1   :  { %v48_v0 = vld [vmem:[%s94_s0 + $0x3] ss:$4 sm:$0xf]   ;;  %v49_v1 = vld [vmem:[%s94_s0 + $0x2] ss:$4 sm:$0xf]  }
   0x2   :  { %7 = vrot.lane.b32.xlu0 %v48_v0, %s57_s8  ;;  %v50_v2 = vld [vmem:[%s94_s0 + $0x1] ss:$4 sm:$0xf]   ;;  %v2_v3 = vld [vmem:[%s94_s0] ss:$4 sm:$0xf]  }
   0x3   :  { %s58_s0 = smov 32   ;;  %4 = vst.msk [vmem:[#allocation0] ss:$8 sm:$0xf] %vm3_vm0, %v2_v3  }
   0x4   :  { %19 = vrot.lane.b32.xlu1 %v50_v2, %s58_s0 }
   0x6   :  { %13 = vrot.lane.b32.xlu0 %v49_v1, %s59_s15 }
  0x74   :  { %v8_v4 = vpop.permute.xlu0 %7  }
  0x75   :  { %10 = vst.msk [vmem:[#allocation0] ss:$8 sm:$0xf] %vm9_vm1, %v8_v4  }
  0x76   :  { %v20_v5 = vpop.permute.xlu1 %19  }
  0x78   :  { %v14_v6 = vpop.permute.xlu0 %13  }
  0x79   :  { %16 = vst.msk [vmem:[#allocation0] ss:$8 sm:$0xf] %vm15_vm2, %v14_v6  }
  0x7a   :  { %22 = vst.msk [vmem:[#allocation0] ss:$8 sm:$0xf] %vm21_vm3, %v20_v5  }
  0x81   :  { %v26_v7 = vld [vmem:[#allocation0] sm:$0x1]  ;;  %v30_v8 = vld [vmem:[#allocation0 + $0x8] sm:$0x1]  ;;  %v35_v9 = vld [vmem:[#allocation0 + $0x10] sm:$0x1] }
  0x82   :  { %28 = vst [vmem:[%s95_s1] sm:$0x1] %v26_v7  ;;  %51 = vst [vmem:[%s95_s1 + $0x1] sm:$0x1] %v30_v8  ;;  %v41_v10 = vld [vmem:[#allocation0 + $0x18] sm:$0x1] }
  0x83   :  { %52 = vst [vmem:[%s95_s1 + $0x2] sm:$0x1] %v35_v9  ;;  %53 = vst [vmem:[%s95_s1 + $0x3] sm:$0x1] %v41_v10 }

// kernel: tile.28
= control target key start
LH: loop header
LB: loop body
LE: loop exit
PB: predicated region body
PF: predicated region fallthrough
CT: control target
= control target key end

     0   :  { %s22_s0 = inlined_call_operand.vmem [shape: f32[32], index: 0, kind: input, shape index: {}]   ;;  %s23_s1 = inlined_call_operand.vmem [shape: f32[8,32], index: 1, kind: output, shape index: {}]  }
   0x1   :  { %v4_v0 = vld [vmem:[%s22_s0] ss:$0 sm:$0xff] }
   0x2   :  { %5 = vst [vmem:[%s23_s1] sm:$0xff] %v4_v0 }

// kernel: tile.29
= control target key start
LH: loop header
LB: loop body
LE: loop exit
PB: predicated region body
PF: predicated region fallthrough
CT: control target
= control target key end

     0   :  { %s7_s6 = smov 3  ;;  %s14_s9 = smov 3  ;;  %vm4_vm0 = vcmask 261120   ;;  %vm11_vm1 = vcmask 1048320   ;;  %vm18_vm2 = vcmask 785920   ;;  %vm25_vm3 = vcmask 523520   ;;  %s76_s0 = inlined_call_operand.vmem [shape: f32[8,32], index: 0, kind: input, shape index: {}]   ;;  %s77_s1 = inlined_call_operand.vmem [shape: f32[1,256], index: 1, kind: output, shape index: {}]  }
   0x1   :  { %v38_v0 = vld [vmem:[%s76_s0 + $0x3] ss:$4 sm:%s7_s6]   ;;  %s45_s10 = smov 96   ;;  %s21_s11 = smov 3  ;;  %v39_v1 = vld [vmem:[%s76_s0 + $0x2] ss:$4 sm:%s14_s9]  }
   0x2   :  { %9 = vrot.lane.b32.xlu0 %v38_v0, %s45_s10  ;;  %v40_v2 = vld [vmem:[%s76_s0 + $0x1] ss:$4 sm:%s21_s11]   ;;  %s2_s16 = smov 3  ;;  %s46_s17 = smov 32  }
   0x3   :  { %23 = vrot.lane.b32.xlu1 %v40_v2, %s46_s17  ;;  %v3_v3 = vld [vmem:[%s76_s0] ss:$4 sm:%s2_s16]   ;;  %s47_s0 = smov 64  }
   0x4   :  { %5 = vst.msk [vmem:[#allocation0] ss:$8 sm:$0x3] %vm4_vm0, %v3_v3  }
   0x6   :  { %16 = vrot.lane.b32.xlu0 %v39_v1, %s47_s0 }
  0x74   :  { %v10_v4 = vpop.permute.xlu0 %9  }
  0x75   :  { %12 = vst.msk [vmem:[#allocation0] ss:$8 sm:$0x3] %vm11_vm1, %v10_v4   ;;  %v24_v5 = vpop.permute.xlu1 %23  }
  0x78   :  { %v17_v6 = vpop.permute.xlu0 %16  }
  0x79   :  { %19 = vst.msk [vmem:[#allocation0] ss:$8 sm:$0x3] %vm18_vm2, %v17_v6  }
  0x7a   :  { %26 = vst.msk [vmem:[#allocation0] ss:$8 sm:$0x3] %vm25_vm3, %v24_v5  }
  0x81   :  { %v30_v7 = vld [vmem:[#allocation0] sm:$0x1]  ;;  %v34_v8 = vld [vmem:[#allocation0 + $0x8] sm:$0x1] }
  0x82   :  { %32 = vst [vmem:[%s77_s1] sm:$0x1] %v30_v7  ;;  %41 = vst [vmem:[%s77_s1 + $0x1] sm:$0x1] %v34_v8 }

// kernel: tile.38
= control target key start
LH: loop header
LB: loop body
LE: loop exit
PB: predicated region body
PF: predicated region fallthrough
CT: control target
= control target key end

     0   :  { %s22_s0 = inlined_call_operand.vmem [shape: f32[16], index: 0, kind: input, shape index: {}]   ;;  %s23_s1 = inlined_call_operand.vmem [shape: f32[8,16], index: 1, kind: output, shape index: {}]  }
   0x1   :  { %v4_v0 = vld [vmem:[%s22_s0] ss:$0 sm:$0xff] }
   0x2   :  { %5 = vst [vmem:[%s23_s1] sm:$0xff] %v4_v0 }

// kernel: tile.39
= control target key start
LH: loop header
LB: loop body
LE: loop exit
PB: predicated region body
PF: predicated region fallthrough
CT: control target
= control target key end

     0   :  { %s67_s10 = smov 112   ;;  %s68_s11 = smov 80   ;;  %vm3_vm0 = vcmask 130048   ;;  %vm9_vm1 = vcmask 1048448   ;;  %vm15_vm2 = vcmask 917248   ;;  %vm21_vm3 = vcmask 786048   ;;  %s111_s0 = inlined_call_operand.vmem [shape: f32[8,16], index: 0, kind: input, shape index: {}]   ;;  %s112_s1 = inlined_call_operand.vmem [shape: f32[1,128], index: 1, kind: output, shape index: {}]  }
   0x1   :  { %v53_v0 = vld [vmem:[%s111_s0 + $0x7] sm:$0x1]   ;;  %v55_v1 = vld [vmem:[%s111_s0 + $0x5] sm:$0x1]   ;;  %v54_v2 = vld [vmem:[%s111_s0 + $0x6] sm:$0x1]  }
   0x2   :  { %7 = vrot.lane.b32.xlu0 %v53_v0, %s67_s10  ;;  %19 = vrot.lane.b32.xlu1 %v55_v1, %s68_s11  ;;  %v56_v3 = vld [vmem:[%s111_s0 + $0x4] sm:$0x1]   ;;  %v2_v4 = vld [vmem:[%s111_s0] sm:$0x1]   ;;  %s69_s18 = smov 96   ;;  %s70_s19 = smov 64  }
   0x3   :  { %4 = vst.msk [vmem:[#allocation0] sm:$0x1] %vm3_vm0, %v2_v4   ;;  %v57_v5 = vld [vmem:[%s111_s0 + $0x3] sm:$0x1]   ;;  %v58_v6 = vld [vmem:[%s111_s0 + $0x2] sm:$0x1]  }
   0x4   :  { %s71_s24 = smov 48   ;;  %s72_s25 = smov 32   ;;  %v59_v7 = vld [vmem:[%s111_s0 + $0x1] sm:$0x1]   ;;  %vm27_vm4 = vcmask 654848   ;;  %vm33_vm5 = vcmask 523648  }
   0x5   :  { %s73_s0 = smov 16   ;;  %vm39_vm6 = vcmask 392448   ;;  %vm45_vm7 = vcmask 261248  }
   0x6   :  { %13 = vrot.lane.b32.xlu0 %v54_v2, %s69_s18  ;;  %25 = vrot.lane.b32.xlu1 %v56_v3, %s70_s19 }
   0xa   :  { %31 = vrot.lane.b32.xlu0 %v57_v5, %s71_s24  ;;  %37 = vrot.lane.b32.xlu1 %v58_v6, %s72_s25 }
   0xe   :  { %43 = vrot.lane.b32.xlu0 %v59_v7, %s73_s0 }
  0x74   :  { %v8_v8 = vpop.permute.xlu0 %7   ;;  %v20_v9 = vpop.permute.xlu1 %19  }
  0x75   :  { %10 = vst.msk [vmem:[#allocation0] sm:$0x1] %vm9_vm1, %v8_v8  }
  0x78   :  { %v14_v10 = vpop.permute.xlu0 %13   ;;  %v26_v11 = vpop.permute.xlu1 %25  }
  0x79   :  { %16 = vst.msk [vmem:[#allocation0] sm:$0x1] %vm15_vm2, %v14_v10  }
  0x7a   :  { %22 = vst.msk [vmem:[#allocation0] sm:$0x1] %vm21_vm3, %v20_v9  }
  0x7b   :  { %28 = vst.msk [vmem:[#allocation0] sm:$0x1] %vm27_vm4, %v26_v11  }
  0x7c   :  { %v32_v12 = vpop.permute.xlu0 %31   ;;  %v38_v13 = vpop.permute.xlu1 %37  }
  0x7d   :  { %34 = vst.msk [vmem:[#allocation0] sm:$0x1] %vm33_vm5, %v32_v12  }
  0x7e   :  { %40 = vst.msk [vmem:[#allocation0] sm:$0x1] %vm39_vm6, %v38_v13  }
  0x80   :  { %v44_v14 = vpop.permute.xlu0 %43  }
  0x81   :  { %46 = vst.msk [vmem:[#allocation0] sm:$0x1] %vm45_vm7, %v44_v14  }
  0x88   :  { %v50_v15 = vld [vmem:[#allocation0] sm:$0x1] }
  0x89   :  { %52 = vst [vmem:[%s112_s1] sm:$0x1] %v50_v15 }

// kernel: tile.33
= control target key start
LH: loop header
LB: loop body
LE: loop exit
PB: predicated region body
PF: predicated region fallthrough
CT: control target
= control target key end

     0   :  { %s22_s0 = inlined_call_operand.vmem [shape: f32[16], index: 0, kind: input, shape index: {}]   ;;  %s23_s1 = inlined_call_operand.vmem [shape: f32[4,16], index: 1, kind: output, shape index: {}]  }
   0x1   :  { %v4_v0 = vld [vmem:[%s22_s0] ss:$0 sm:$0xff] }
   0x2   :  { %5 = vst [vmem:[%s23_s1] sm:$0xf] %v4_v0 }

// kernel: tile.34
= control target key start
LH: loop header
LB: loop body
LE: loop exit
PB: predicated region body
PF: predicated region fallthrough
CT: control target
= control target key end

     0   :  { %vm7_vm0 = vcmask 130048   ;;  %s37_s8 = smov 16   ;;  %s38_s9 = smov 32   ;;  %vm13_vm1 = vcmask 523648   ;;  %vm19_vm2 = vcmask 392448   ;;  %vm25_vm3 = vcmask 261248   ;;  %s55_s0 = inlined_call_operand.vmem [shape: f32[4,16], index: 0, kind: input, shape index: {}]   ;;  %s56_s1 = inlined_call_operand.vmem [shape: f32[1,64], index: 1, kind: output, shape index: {}]  }
   0x1   :  { %v4_v0 = vld [vmem:[%s55_s0] sm:$0xf]  ;;  %s36_s0 = smov 48  }
   0x2   :  { %5 = vst [vmem:[#allocation1] sm:$0xf] %v4_v0 }
   0x9   :  { %v10_v1 = vld [vmem:[#allocation1 + $0x3] sm:$0x1]   ;;  %v22_v2 = vld [vmem:[#allocation1 + $0x1] sm:$0x1]   ;;  %v6_v3 = vld [vmem:[#allocation1] sm:$0x1]  }
   0xa   :  { %11 = vrot.lane.b32.xlu0 %v10_v1, %s36_s0  ;;  %23 = vrot.lane.b32.xlu1 %v22_v2, %s37_s8  ;;  %v16_v4 = vld [vmem:[#allocation1 + $0x2] sm:$0x1]   ;;  %8 = vst.msk [vmem:[#allocation0] sm:$0x1] %vm7_vm0, %v6_v3  }
   0xe   :  { %17 = vrot.lane.b32.xlu0 %v16_v4, %s38_s9 }
  0x7c   :  { %v12_v5 = vpop.permute.xlu0 %11   ;;  %v24_v6 = vpop.permute.xlu1 %23  }
  0x7d   :  { %14 = vst.msk [vmem:[#allocation0] sm:$0x1] %vm13_vm1, %v12_v5  }
  0x80   :  { %v18_v7 = vpop.permute.xlu0 %17  }
  0x81   :  { %20 = vst.msk [vmem:[#allocation0] sm:$0x1] %vm19_vm2, %v18_v7  }
  0x82   :  { %26 = vst.msk [vmem:[#allocation0] sm:$0x1] %vm25_vm3, %v24_v6  }
  0x89   :  { %v30_v8 = vld [vmem:[#allocation0] sm:$0x1] }
  0x8a   :  { %32 = vst [vmem:[%s56_s1] sm:$0x1] %v30_v8 }

// kernel: conv_autoencoder_forward.1
= control target key start
LH: loop header
LB: loop body
LE: loop exit
PB: predicated region body
PF: predicated region fallthrough
CT: control target
= control target key end

     0   :  { %v1134_v5 = vmov 0.0   ;;  %vm56_vm0 = vcmask 130048   ;;  %s1762_s0 = inlined_call_operand.vmem [shape: f32[2,16], index: 0, kind: input, shape index: {}]   ;;  %s1763_s1 = inlined_call_operand.vmem [shape: f32[16,256], index: 1, kind: input, shape index: {}]   ;;  %s1764_s2 = inlined_call_operand.vmem [shape: f32[1,256], index: 2, kind: input, shape index: {}]   ;;  %s1765_s3 = inlined_call_operand.vmem [shape: f32[256,64], index: 3, kind: input, shape index: {}]   ;;  %s1766_s4 = inlined_call_operand.vmem [shape: f32[1,64], index: 4, kind: input, shape index: {}]   ;;  %s1767_s5 = inlined_call_operand.vmem [shape: f32[64,128], index: 5, kind: input, shape index: {}]   ;;  %s1768_s6 = inlined_call_operand.vmem [shape: f32[1,128], index: 6, kind: input, shape index: {}]   ;;  %s1769_s7 = inlined_call_operand.vmem [shape: f32[128,512], index: 7, kind: input, shape index: {}]   ;;  %s1770_s8 = inlined_call_operand.vmem [shape: f32[1,512], index: 8, kind: input, shape index: {}]   ;;  %s1771_s9 = inlined_call_operand.vmem [shape: f32[512,16], index: 9, kind: input, shape index: {}]   ;;  %s1772_s10 = inlined_call_operand.vmem [shape: f32[1,16], index: 10, kind: input, shape index: {}]   ;;  %s1773_s11 = inlined_call_operand.hbm [shape: f32[2,16], index: 11, kind: output, shape index: {}]  }
   0x1   :  { %v41_v0 = vld [vmem:[%s1763_s1 + $0x8] sm:$0xff]  ;;  %v43_v1 = vld [vmem:[%s1763_s1 + $0x18] sm:$0xff]  ;;  %v40_v2 = vld [vmem:[%s1763_s1] sm:$0xff]  ;;  %124 = vmatprep.mubr.f32.mxu0 %v1134_v5 }
   0x2   :  { %v930_v3 = vpack.c.bf16 %v43_v1, %v41_v0  ;;  %v42_v4 = vld [vmem:[%s1763_s1 + $0x10] sm:$0xff]  ;;  %v149_v6 = vld [vmem:[%s1765_s3 + $0x80] sm:$0xff]  ;;  %v150_v9 = vld [vmem:[%s1765_s3 + $0x88] sm:$0xff] }
   0x3   :  { %v932_v7 = vpack.c.bf16 %v42_v4, %v40_v2  ;;  %v39_v8 = vld [vmem:[%s1762_s0] sm:$0x3]  ;;  %v134_v11 = vld [vmem:[%s1765_s3 + $0x8] sm:$0xff]  ;;  %v934_v12 = vpack.c.bf16 %v150_v9, %v149_v6  ;;  %v151_v14 = vld [vmem:[%s1765_s3 + $0x90] sm:$0xff] }
   0x4   :  { %v133_v10 = vld [vmem:[%s1765_s3] sm:$0xff]  ;;  %931 = vmatprep.subr.bf16.mxu0 %v930_v3  ;;  %v152_v15 = vld [vmem:[%s1765_s3 + $0x98] sm:$0xff]  ;;  %v135_v16 = vld [vmem:[%s1765_s3 + $0x10] sm:$0xff] }
   0x5   :  { %v936_v13 = vpack.c.bf16 %v134_v11, %v133_v10  ;;  %933 = vmatpush1.bf16.msra.mxu0 %v932_v7  ;;  %v938_v17 = vpack.c.bf16 %v152_v15, %v151_v14  ;;  %v136_v18 = vld [vmem:[%s1765_s3 + $0x18] sm:$0xff]  ;;  %v153_v19 = vld [vmem:[%s1765_s3 + $0xa0] sm:$0xff]  ;;  %v154_v20 = vld [vmem:[%s1765_s3 + $0xa8] sm:$0xff]  ;;  %935 = vmatprep.subr.bf16.mxu1 %v934_v12 }
   0x6   :  { %v940_v21 = vpack.c.bf16 %v136_v18, %v135_v16  ;;  %v942_v22 = vpack.c.bf16 %v154_v20, %v153_v19  ;;  %v137_v23 = vld [vmem:[%s1765_s3 + $0x20] sm:$0xff]  ;;  %v138_v24 = vld [vmem:[%s1765_s3 + $0x28] sm:$0xff]  ;;  %v155_v25 = vld [vmem:[%s1765_s3 + $0xb0] sm:$0xff] }
   0x7   :  { %937 = vmatpush3.bf16.msra.mxu1 %v936_v13  ;;  %v156_v26 = vld [vmem:[%s1765_s3 + $0xb8] sm:$0xff]  ;;  %v944_v27 = vpack.c.bf16 %v138_v24, %v137_v23 }
   0x8   :  { %792 = vmatmul.mubr.msk.f32.vlgmr.msra.gmra.mrb[0].mxu0 %vm56_vm0, %v39_v8  ;;  %939 = vmatprep.subr.bf16.mxu1 %v938_v17 }
   0xb   :  { %941 = vmatpush3.bf16.msra.mxu1 %v940_v21 }
   0xc   :  { %16 = vsyncpa [#allocation3], 0  ;;  %943 = vmatprep.subr.bf16.mxu1 %v942_v22  ;;  %v946_v28 = vpack.c.bf16 %v156_v26, %v155_v25  ;;  %v139_v29 = vld [vmem:[%s1765_s3 + $0x30] sm:$0xff]  ;;  %v140_v30 = vld [vmem:[%s1765_s3 + $0x38] sm:$0xff]  ;;  %v1135_v59 = vmov 0.0|0.0   ;;  %v46_v63 = vlaneseq  ;;  %vm1136_vm1 = vmmov 0  }
   0xd   :  { %v157_v31 = vld [vmem:[%s1765_s3 + $0xc0] sm:$0xff]  ;;  %v158_v32 = vld [vmem:[%s1765_s3 + $0xc8] sm:$0xff]  ;;  %v948_v33 = vpack.c.bf16 %v140_v30, %v139_v29  ;;  %v159_v37 = vld [vmem:[%s1765_s3 + $0xd0] sm:$0xff]  ;;  %966 = vmatprep.subr.bf16.mxu0 %v1135_v59  ;;  %927 = vmatprep.mubr.msk.f32.mxu0 %vm1136_vm1, %v1134_v5  ;;  %vm258_vm2 = vcmask 523264   ;;  %s1137_s27 = smov [#allocation2]   ;;  %vm776_vm3 = vcmask 123904  }
   0xe   :  { %v950_v34 = vpack.c.bf16 %v158_v32, %v157_v31  ;;  %v141_v35 = vld [vmem:[%s1765_s3 + $0x40] sm:$0xff]  ;;  %v142_v36 = vld [vmem:[%s1765_s3 + $0x48] sm:$0xff]  ;;  %v160_v38 = vld [vmem:[%s1765_s3 + $0xd8] sm:$0xff]  ;;  %v1322_v0 = vshrl.u32 %v46_v63, 7  ;;  %s784_s28 = sshll.u32 %s1137_s27, 4  ;;  %s785_s28 = int_to_ptr.vmem [resolvable:$true] %s784_s28 }
   0xf   :  { %945 = vmatpush3.bf16.msra.mxu1 %v944_v27  ;;  %v952_v39 = vpack.c.bf16 %v142_v36, %v141_v35  ;;  %v954_v40 = vpack.c.bf16 %v160_v38, %v159_v37  ;;  %v143_v41 = vld [vmem:[%s1765_s3 + $0x50] sm:$0xff]  ;;  %v144_v42 = vld [vmem:[%s1765_s3 + $0x58] sm:$0xff]  ;;  %v161_v43 = vld [vmem:[%s1765_s3 + $0xe0] sm:$0xff]  ;;  %s1110_s29 = scalar_lea.vmem %s785_s28, 32  ;;  %p1115_p1 = scmp.lt.s32.totalorder %s785_s28, %s785_s28 }
  0x10   :  { %947 = vmatprep.subr.bf16.mxu1 %v946_v28  ;;  %v162_v44 = vld [vmem:[%s1765_s3 + $0xe8] sm:$0xff]  ;;  %v956_v45 = vpack.c.bf16 %v144_v42, %v143_v41  ;;  %v145_v47 = vld [vmem:[%s1765_s3 + $0x60] sm:$0xff]  ;;  %v163_v50 = vld [vmem:[%s1765_s3 + $0xf0] sm:$0xff]  ;;  %v48_v1 = vsub.s32 0, %v1322_v0  ;;  %v52_v3 = vsub.s32 1, %v1322_v0  ;;  %p1111_p0 = scmp.ne.s32.totalorder %s785_s28, %s1110_s29  ;;  %p1116_p2 = scmp.lt.s32.totalorder %s1110_s29, %s1110_s29 }
  0x11   :  { %v958_v46 = vpack.c.bf16 %v162_v44, %v161_v43  ;;  %v146_v48 = vld [vmem:[%s1765_s3 + $0x68] sm:$0xff]  ;;  %v164_v51 = vld [vmem:[%s1765_s3 + $0xf8] sm:$0xff]  ;;  %v147_v53 = vld [vmem:[%s1765_s3 + $0x70] sm:$0xff] }
  0x12   :  { %v960_v49 = vpack.c.bf16 %v146_v48, %v145_v47  ;;  %v962_v52 = vpack.c.bf16 %v164_v51, %v163_v50  ;;  %v148_v54 = vld [vmem:[%s1765_s3 + $0x78] sm:$0xff]  ;;  %v243_v56 = vld [vmem:[%s1767_s5] sm:$0xff]  ;;  %v244_v57 = vld [vmem:[%s1767_s5 + $0x8] sm:$0xff]  ;;  %p1117_p3 = por %p1116_p2, %p1115_p1 }
  0x13   :  { %949 = vmatpush3.bf16.msra.mxu1 %v948_v33  ;;  %v964_v55 = vpack.c.bf16 %v148_v54, %v147_v53  ;;  %v245_v58 = vld [vmem:[%s1767_s5 + $0x10] sm:$0xff]  ;;  %v967_v60 = vpack.c.bf16 %v244_v57, %v243_v56  ;;  %v246_v61 = vld [vmem:[%s1767_s5 + $0x18] sm:$0xff]  ;;  %v44_v2 = vld [vmem:[%s1764_s2] sm:$0x3] }
  0x14   :  { %951 = vmatprep.subr.bf16.mxu1 %v950_v34  ;;  %v970_v62 = vpack.c.bf16 %v246_v61, %v245_v58  ;;  %v49_v4 = vrot.slane %v44_v2, %v48_v1  ;;  %v53_v6 = vrot.slane %v44_v2, %v52_v3  ;;  %v247_v13 = vld [vmem:[%s1767_s5 + $0x20] sm:$0xff]  ;;  %v248_v14 = vld [vmem:[%s1767_s5 + $0x28] sm:$0xff]  ;;  %v249_v16 = vld [vmem:[%s1767_s5 + $0x30] sm:$0xff]  ;;  %p1118_p4 = pnand %p1117_p3, %p1111_p0 }
  0x15   :  { %968 = vmatpush3.bf16.msra.mxu0 %v967_v60  ;;  %v973_v15 = vpack.c.bf16 %v248_v14, %v247_v13  ;;  %v250_v17 = vld [vmem:[%s1767_s5 + $0x38] sm:$0xff]  ;;  %v334_v19 = vld [vmem:[%s1769_s7 + $0x8] sm:$0xff]  ;;  %v335_v25 = vld [vmem:[%s1769_s7 + $0x10] sm:$0xff] }
  0x16   :  { %969 = vmatprep.subr.bf16.mxu0 %v1135_v59  ;;  %v976_v18 = vpack.c.bf16 %v250_v17, %v249_v16  ;;  %v338_v20 = vld [vmem:[%s1769_s7 + $0x28] sm:$0xff]  ;;  %v336_v21 = vld [vmem:[%s1769_s7 + $0x18] sm:$0xff]  ;;  %v339_v26 = vld [vmem:[%s1769_s7 + $0x30] sm:$0xff] }
  0x17   :  { %953 = vmatpush3.bf16.msra.mxu1 %v952_v39  ;;  %v978_v22 = vpack.c.bf16 %v338_v20, %v334_v19  ;;  %v340_v23 = vld [vmem:[%s1769_s7 + $0x38] sm:$0xff]  ;;  %v1012_v27 = vpack.c.bf16 %v339_v26, %v335_v25  ;;  %v343_v31 = vld [vmem:[%s1769_s7 + $0x50] sm:$0xff]  ;;  %v341_v16 = vld [vmem:[%s1769_s7 + $0x40] sm:$0xff] }
  0x18   :  { %955 = vmatprep.subr.bf16.mxu1 %v954_v40  ;;  %v1010_v24 = vpack.c.bf16 %v340_v23, %v336_v21  ;;  %v344_v28 = vld [vmem:[%s1769_s7 + $0x58] sm:$0xff]  ;;  %v347_v32 = vld [vmem:[%s1769_s7 + $0x70] sm:$0xff]  ;;  %v345_v17 = vld [vmem:[%s1769_s7 + $0x60] sm:$0xff] }
  0x19   :  { %971 = vmatpush3.bf16.msra.mxu0 %v970_v62  ;;  %v348_v29 = vld [vmem:[%s1769_s7 + $0x78] sm:$0xff]  ;;  %v1016_v33 = vpack.c.bf16 %v347_v32, %v343_v31  ;;  %v351_v37 = vld [vmem:[%s1769_s7 + $0x90] sm:$0xff]  ;;  %v354_v19 = vld [vmem:[%s1769_s7 + $0xa8] sm:$0xff]  ;;  %v984_v20 = vpack.c.bf16 %v345_v17, %v341_v16 }
  0x1a   :  { %972 = vmatprep.subr.bf16.mxu0 %v1135_v59  ;;  %v1014_v30 = vpack.c.bf16 %v348_v29, %v344_v28  ;;  %v352_v34 = vld [vmem:[%s1769_s7 + $0x98] sm:$0xff]  ;;  %v355_v38 = vld [vmem:[%s1769_s7 + $0xb0] sm:$0xff]  ;;  %v353_v23 = vld [vmem:[%s1769_s7 + $0xa0] sm:$0xff] }
  0x1b   :  { %957 = vmatpush3.bf16.msra.mxu1 %v956_v45  ;;  %v356_v35 = vld [vmem:[%s1769_s7 + $0xb8] sm:$0xff]  ;;  %v1020_v39 = vpack.c.bf16 %v355_v38, %v351_v37  ;;  %v359_v43 = vld [vmem:[%s1769_s7 + $0xd0] sm:$0xff]  ;;  %v362_v25 = vld [vmem:[%s1769_s7 + $0xe8] sm:$0xff] }
  0x1c   :  { %959 = vmatprep.subr.bf16.mxu1 %v958_v46  ;;  %v1018_v36 = vpack.c.bf16 %v356_v35, %v352_v34  ;;  %v360_v40 = vld [vmem:[%s1769_s7 + $0xd8] sm:$0xff]  ;;  %v363_v44 = vld [vmem:[%s1769_s7 + $0xf0] sm:$0xff]  ;;  %v361_v28 = vld [vmem:[%s1769_s7 + $0xe0] sm:$0xff] }
  0x1d   :  { %974 = vmatpush3.bf16.msra.mxu0 %v973_v15  ;;  %v364_v41 = vld [vmem:[%s1769_s7 + $0xf8] sm:$0xff]  ;;  %v1024_v45 = vpack.c.bf16 %v363_v44, %v359_v43  ;;  %v371_v50 = vld [vmem:[%s1769_s7 + $0x130] sm:$0xff]  ;;  %v366_v29 = vld [vmem:[%s1769_s7 + $0x108] sm:$0xff] }
  0x1e   :  { %975 = vmatprep.subr.bf16.mxu0 %v1135_v59  ;;  %v1022_v42 = vpack.c.bf16 %v364_v41, %v360_v40  ;;  %v368_v46 = vld [vmem:[%s1769_s7 + $0x118] sm:$0xff]  ;;  %v379_v56 = vld [vmem:[%s1769_s7 + $0x170] sm:$0xff]  ;;  %v369_v34 = vld [vmem:[%s1769_s7 + $0x120] sm:$0xff] }
  0x1f   :  { %961 = vmatpush3.bf16.msra.mxu1 %v960_v49  ;;  %v372_v47 = vld [vmem:[%s1769_s7 + $0x138] sm:$0xff]  ;;  %v367_v49 = vld [vmem:[%s1769_s7 + $0x110] sm:$0xff]  ;;  %v374_v35 = vld [vmem:[%s1769_s7 + $0x148] sm:$0xff] }
  0x20   :  { %963 = vmatprep.subr.bf16.mxu1 %v962_v52  ;;  %v1026_v48 = vpack.c.bf16 %v372_v47, %v368_v46  ;;  %v1028_v51 = vpack.c.bf16 %v371_v50, %v367_v49  ;;  %v376_v52 = vld [vmem:[%s1769_s7 + $0x158] sm:$0xff]  ;;  %v383_v61 = vld [vmem:[%s1769_s7 + $0x190] sm:$0xff]  ;;  %v377_v40 = vld [vmem:[%s1769_s7 + $0x160] sm:$0xff] }
  0x21   :  { %977 = vmatpush3.bf16.msra.mxu0 %v976_v18  ;;  %v380_v53 = vld [vmem:[%s1769_s7 + $0x178] sm:$0xff]  ;;  %v387_v62 = vld [vmem:[%s1769_s7 + $0x1b0] sm:$0xff]  ;;  %v350_v18 = vld [vmem:[%s1769_s7 + $0x88] sm:$0xff] }
  0x22   :  { %979 = vmatprep.subr.bf16.mxu0 %v978_v22  ;;  %v1030_v54 = vpack.c.bf16 %v380_v53, %v376_v52  ;;  %v384_v58 = vld [vmem:[%s1769_s7 + $0x198] sm:$0xff]  ;;  %v1036_v63 = vpack.c.bf16 %v387_v62, %v383_v61  ;;  %v986_v21 = vpack.c.bf16 %v354_v19, %v350_v18  ;;  %v349_v22 = vld [vmem:[%s1769_s7 + $0x80] sm:$0xff]  ;;  %v382_v41 = vld [vmem:[%s1769_s7 + $0x188] sm:$0xff] }
  0x23   :  { %965 = vmatpush3.bf16.msra.mxu1 %v964_v55  ;;  %v375_v55 = vld [vmem:[%s1769_s7 + $0x150] sm:$0xff]  ;;  %v388_v59 = vld [vmem:[%s1769_s7 + $0x1b8] sm:$0xff]  ;;  %v385_v46 = vld [vmem:[%s1769_s7 + $0x1a0] sm:$0xff] }
  0x24   :  { %1011 = vmatprep.subr.bf16.mxu1 %v1010_v24  ;;  %v1032_v57 = vpack.c.bf16 %v379_v56, %v375_v55  ;;  %v1034_v60 = vpack.c.bf16 %v388_v59, %v384_v58  ;;  %v358_v24 = vld [vmem:[%s1769_s7 + $0xc8] sm:$0xff]  ;;  %v392_v50 = vld [vmem:[%s1769_s7 + $0x1d8] sm:$0xff]  ;;  %v389_v53 = vld [vmem:[%s1769_s7 + $0x1c0] sm:$0xff] }
  0x25   :  { %v990_v26 = vpack.c.bf16 %v362_v25, %v358_v24  ;;  %v394_v49 = vld [vmem:[%s1769_s7 + $0x1e8] sm:$0xff]  ;;  %v396_v52 = vld [vmem:[%s1769_s7 + $0x1f8] sm:$0xff]  ;;  %v395_v58 = vld [vmem:[%s1769_s7 + $0x1f0] sm:$0xff] }
  0x26   :  { %v1038_v55 = vpack.c.bf16 %v396_v52, %v392_v50  ;;  %v582_v61 = vld [vmem:[%s1771_s9 + $0x88] sm:$0xff]  ;;  %v613_v62 = vld [vmem:[%s1771_s9 + $0x180] sm:$0xff]  ;;  %v599_v25 = vld [vmem:[%s1771_s9 + $0x110] sm:$0xff] }
  0x27   :  { %v589_v50 = vld [vmem:[%s1771_s9 + $0xc0] sm:$0xff] }
  0x28   :  { %v621_v52 = vld [vmem:[%s1771_s9 + $0x1c0] sm:$0xff] }
  0xdb   :  { %v126_v7 = vpop.f32.mrb[0].mxu0 }
  0xdc   :  { %v127_v8 = vadd.f32 %v126_v7, %v49_v4  ;;  %v128_v9 = vpop.f32.mrb[1].mxu0  ;;  %v793_v4 = vld [vmem:[%s1766_s4] ss:$0 sm:$0xff] }
  0xdd   :  { %v129_v10 = vadd.f32 %v128_v9, %v53_v6  ;;  %v337_v9 = vld [vmem:[%s1769_s7 + $0x20] sm:$0xff] }
  0xde   :  { %v131_v12 = vmax.f32 %v127_v8, 0.0  ;;  %v333_v8 = vld [vmem:[%s1769_s7] sm:$0xff] }
  0xdf   :  { %v132_v11 = vmax.f32 %v129_v10, 0.0  ;;  %v342_v10 = vld [vmem:[%s1769_s7 + $0x48] sm:$0xff]  ;;  %v980_v13 = vpack.c.bf16 %v337_v9, %v333_v8  ;;  %v597_v9 = vld [vmem:[%s1771_s9 + $0x100] sm:$0xff] }
  0xe0   :  { %v566_v8 = vld [vmem:[%s1771_s9 + $0x8] sm:$0xff] }
  0xe1   :  { %236 = vmatprep.mubr.f32.mxu1 %v132_v11  ;;  %v346_v11 = vld [vmem:[%s1769_s7 + $0x68] sm:$0xff] }
  0xe2   :  { %237 = vmatmul.mubr.f32.vlgmr.msra.gmra.mrb[0].mxu1 %v131_v12  ;;  %v982_v15 = vpack.c.bf16 %v346_v11, %v342_v10  ;;  %v598_v10 = vld [vmem:[%s1771_s9 + $0x108] sm:$0xff]  ;;  %v583_v11 = vld [vmem:[%s1771_s9 + $0x90] sm:$0xff] }
  0xe3   :  { %554 = vmatprep.mubr.f32.mxu1 %v1134_v5  ;;  %1013 = vmatpush1.bf16.msra.mxu1 %v1012_v27  ;;  %v357_v27 = vld [vmem:[%s1769_s7 + $0xc0] sm:$0xff]  ;;  %v1076_v19 = vpack.c.bf16 %v598_v10, %v597_v9  ;;  %v576_v9 = vld [vmem:[%s1771_s9 + $0x58] sm:$0xff] }
  0xe4   :  { %1015 = vmatprep.subr.bf16.mxu1 %v1014_v30  ;;  %v370_v30 = vld [vmem:[%s1769_s7 + $0x128] sm:$0xff]  ;;  %v992_v31 = vpack.c.bf16 %v361_v28, %v357_v27  ;;  %v617_v28 = vld [vmem:[%s1771_s9 + $0x1a0] sm:$0xff] }
  0xe5   :  { %v994_v32 = vpack.c.bf16 %v370_v30, %v366_v29  ;;  %v586_v27 = vld [vmem:[%s1771_s9 + $0xa8] sm:$0xff] }
  0xe6   :  { %v618_v29 = vld [vmem:[%s1771_s9 + $0x1a8] sm:$0xff] }
  0xe7   :  { %1017 = vmatpush1.bf16.msra.mxu1 %v1016_v33  ;;  %v365_v33 = vld [vmem:[%s1769_s7 + $0x100] sm:$0xff] }
  0xe8   :  { %1019 = vmatprep.subr.bf16.mxu1 %v1018_v36  ;;  %v378_v36 = vld [vmem:[%s1769_s7 + $0x168] sm:$0xff]  ;;  %v996_v37 = vpack.c.bf16 %v369_v34, %v365_v33 }
  0xe9   :  { %v998_v38 = vpack.c.bf16 %v378_v36, %v374_v35  ;;  %v570_v33 = vld [vmem:[%s1771_s9 + $0x28] sm:$0xff]  ;;  %v1082_v35 = vpack.c.bf16 %v618_v29, %v617_v28  ;;  %v601_v36 = vld [vmem:[%s1771_s9 + $0x120] sm:$0xff]  ;;  %v596_v28 = vld [vmem:[%s1771_s9 + $0xf8] sm:$0xff] }
  0xea   :  { %v627_v29 = vld [vmem:[%s1771_s9 + $0x1f0] sm:$0xff] }
  0xeb   :  { %1021 = vmatpush1.bf16.msra.mxu1 %v1020_v39  ;;  %v373_v39 = vld [vmem:[%s1769_s7 + $0x140] sm:$0xff] }
  0xec   :  { %1023 = vmatprep.subr.bf16.mxu1 %v1022_v42  ;;  %v386_v42 = vld [vmem:[%s1769_s7 + $0x1a8] sm:$0xff]  ;;  %v1000_v43 = vpack.c.bf16 %v377_v40, %v373_v39  ;;  %v588_v39 = vld [vmem:[%s1771_s9 + $0xb8] sm:$0xff]  ;;  %v619_v40 = vld [vmem:[%s1771_s9 + $0x1b0] sm:$0xff] }
  0xed   :  { %v1002_v44 = vpack.c.bf16 %v386_v42, %v382_v41  ;;  %v620_v41 = vld [vmem:[%s1771_s9 + $0x1b8] sm:$0xff] }
  0xef   :  { %1025 = vmatpush1.bf16.msra.mxu1 %v1024_v45  ;;  %v381_v45 = vld [vmem:[%s1769_s7 + $0x180] sm:$0xff] }
  0xf0   :  { %1027 = vmatprep.subr.bf16.mxu1 %v1026_v48  ;;  %v1004_v47 = vpack.c.bf16 %v385_v46, %v381_v45  ;;  %v390_v48 = vld [vmem:[%s1769_s7 + $0x1c8] sm:$0xff]  ;;  %v572_v45 = vld [vmem:[%s1771_s9 + $0x38] sm:$0xff] }
  0xf3   :  { %1029 = vmatpush1.bf16.msra.mxu1 %v1028_v51  ;;  %v1006_v51 = vpack.c.bf16 %v394_v49, %v390_v48  ;;  %v603_v48 = vld [vmem:[%s1771_s9 + $0x130] sm:$0xff]  ;;  %v604_v49 = vld [vmem:[%s1771_s9 + $0x138] sm:$0xff] }
  0xf4   :  { %1031 = vmatprep.subr.bf16.mxu1 %v1030_v54  ;;  %v393_v54 = vld [vmem:[%s1769_s7 + $0x1e0] sm:$0xff] }
  0xf5   :  { %v1008_v56 = vpack.c.bf16 %v393_v54, %v389_v53  ;;  %v622_v53 = vld [vmem:[%s1771_s9 + $0x1c8] sm:$0xff] }
  0xf7   :  { %1033 = vmatpush1.bf16.msra.mxu1 %v1032_v57  ;;  %v391_v57 = vld [vmem:[%s1769_s7 + $0x1d0] sm:$0xff] }
  0xf8   :  { %1035 = vmatprep.subr.bf16.mxu1 %v1034_v60  ;;  %v1040_v59 = vpack.c.bf16 %v395_v58, %v391_v57  ;;  %v581_v60 = vld [vmem:[%s1771_s9 + $0x80] sm:$0xff]  ;;  %v574_v57 = vld [vmem:[%s1771_s9 + $0x48] sm:$0xff] }
  0xfb   :  { %1037 = vmatpush1.bf16.msra.mxu1 %v1036_v63  ;;  %v1042_v63 = vpack.c.bf16 %v582_v61, %v581_v60  ;;  %v605_v60 = vld [vmem:[%s1771_s9 + $0x140] sm:$0xff]  ;;  %v606_v61 = vld [vmem:[%s1771_s9 + $0x148] sm:$0xff] }
  0xfc   :  { %1039 = vmatprep.subr.bf16.mxu1 %v1038_v55  ;;  %v1088_v55 = vpack.c.bf16 %v604_v49, %v603_v48 }
  0xff   :  { %1041 = vmatpush1.bf16.msra.mxu1 %v1040_v59  ;;  %v1090_v59 = vpack.c.bf16 %v622_v53, %v621_v52 }
 0x1b5   :  { %v829_v2 = vpop.f32.mrb[0].mxu1 }
 0x1b6   :  { %v830_v6 = vpop.f32.mrb[1].mxu1 }
 0x1b7   :  { %v831_v7 = vadd.f32 %v830_v6, %v829_v2  ;;  %v614_v2 = vld [vmem:[%s1771_s9 + $0x188] sm:$0xff]  ;;  %v794_v6 = vld [vmem:[%s1768_s6] ss:$0 sm:$0xff] }
 0x1b9   :  { %v239_v12 = vadd.f32 %v831_v7, %v793_v4  ;;  %v1074_v4 = vpack.c.bf16 %v614_v2, %v613_v62  ;;  %v565_v7 = vld [vmem:[%s1771_s9] sm:$0xff]  ;;  %v591_v62 = vld [vmem:[%s1771_s9 + $0xd0] sm:$0xff] }
 0x1ba   :  { %v1044_v18 = vpack.c.bf16 %v566_v8, %v565_v7  ;;  %v623_v2 = vld [vmem:[%s1771_s9 + $0x1d0] sm:$0xff]  ;;  %v1092_v7 = vpack.c.bf16 %v606_v61, %v605_v60 }
 0x1bb   :  { %v242_v14 = vmax.f32 %v239_v12, 0.0  ;;  %1075 = vmatprep.subr.bf16.mxu1 %v1074_v4  ;;  %v624_v4 = vld [vmem:[%s1771_s9 + $0x1d8] sm:$0xff]  ;;  %v575_v8 = vld [vmem:[%s1771_s9 + $0x50] sm:$0xff] }
 0x1bd   :  { %928 = vmatmul.mubr.msk.f32.vlgmr.msra.gmra.mrb[2].mxu0 %vm258_vm2, %v242_v14  ;;  %v615_v14 = vld [vmem:[%s1771_s9 + $0x190] sm:$0xff] }
 0x1be   :  { %981 = vmatpush1.bf16.msra.mxu0 %v980_v13  ;;  %483 = vmatprep.mubr.f32.mxu0 %v1134_v5  ;;  %v988_v5 = vpack.c.bf16 %v353_v23, %v349_v22  ;;  %v584_v13 = vld [vmem:[%s1771_s9 + $0x98] sm:$0xff] }
 0x1bf   :  { %983 = vmatprep.subr.bf16.mxu0 %v982_v15  ;;  %v616_v15 = vld [vmem:[%s1771_s9 + $0x198] sm:$0xff]  ;;  %v1046_v23 = vpack.c.bf16 %v584_v13, %v583_v11  ;;  %v1094_v11 = vpack.c.bf16 %v624_v4, %v623_v2 }
 0x1c0   :  { %v1078_v24 = vpack.c.bf16 %v616_v15, %v615_v14  ;;  %v608_v13 = vld [vmem:[%s1771_s9 + $0x158] sm:$0xff]  ;;  %v593_v14 = vld [vmem:[%s1771_s9 + $0xe0] sm:$0xff]  ;;  %v594_v15 = vld [vmem:[%s1771_s9 + $0xe8] sm:$0xff] }
 0x1c2   :  { %985 = vmatpush1.bf16.msra.mxu0 %v984_v20  ;;  %v567_v20 = vld [vmem:[%s1771_s9 + $0x10] sm:$0xff] }
 0x1c3   :  { %987 = vmatprep.subr.bf16.mxu0 %v986_v21  ;;  %v568_v21 = vld [vmem:[%s1771_s9 + $0x18] sm:$0xff] }
 0x1c4   :  { %v1048_v30 = vpack.c.bf16 %v568_v21, %v567_v20  ;;  %v1066_v20 = vpack.c.bf16 %v594_v15, %v593_v14 }
 0x1c6   :  { %989 = vmatpush1.bf16.msra.mxu0 %v988_v5  ;;  %v600_v5 = vld [vmem:[%s1771_s9 + $0x118] sm:$0xff] }
 0x1c7   :  { %991 = vmatprep.subr.bf16.mxu0 %v990_v26  ;;  %v585_v26 = vld [vmem:[%s1771_s9 + $0xa0] sm:$0xff] }
 0x1c8   :  { %v1050_v34 = vpack.c.bf16 %v586_v27, %v585_v26  ;;  %v595_v27 = vld [vmem:[%s1771_s9 + $0xf0] sm:$0xff] }
 0x1ca   :  { %993 = vmatpush1.bf16.msra.mxu0 %v992_v31  ;;  %v1080_v31 = vpack.c.bf16 %v600_v5, %v599_v25  ;;  %v610_v5 = vld [vmem:[%s1771_s9 + $0x168] sm:$0xff] }
 0x1cb   :  { %995 = vmatprep.subr.bf16.mxu0 %v994_v32  ;;  %v569_v32 = vld [vmem:[%s1771_s9 + $0x20] sm:$0xff] }
 0x1cc   :  { %v1052_v42 = vpack.c.bf16 %v570_v33, %v569_v32  ;;  %v579_v32 = vld [vmem:[%s1771_s9 + $0x70] sm:$0xff]  ;;  %v580_v33 = vld [vmem:[%s1771_s9 + $0x78] sm:$0xff] }
 0x1ce   :  { %997 = vmatpush1.bf16.msra.mxu0 %v996_v37  ;;  %v602_v37 = vld [vmem:[%s1771_s9 + $0x128] sm:$0xff] }
 0x1cf   :  { %999 = vmatprep.subr.bf16.mxu0 %v998_v38  ;;  %v587_v38 = vld [vmem:[%s1771_s9 + $0xb0] sm:$0xff] }
 0x1d0   :  { %v1054_v46 = vpack.c.bf16 %v588_v39, %v587_v38  ;;  %v409_v39 = vsub.s32 2, %v1322_v0 }
 0x1d2   :  { %1001 = vmatpush1.bf16.msra.mxu0 %v1000_v43  ;;  %v1084_v43 = vpack.c.bf16 %v602_v37, %v601_v36  ;;  %v611_v36 = vld [vmem:[%s1771_s9 + $0x170] sm:$0xff]  ;;  %v612_v37 = vld [vmem:[%s1771_s9 + $0x178] sm:$0xff] }
 0x1d3   :  { %1003 = vmatprep.subr.bf16.mxu0 %v1002_v44  ;;  %v571_v44 = vld [vmem:[%s1771_s9 + $0x30] sm:$0xff]  ;;  %v1104_v38 = vpack.c.bf16 %v612_v37, %v611_v36 }
 0x1d4   :  { %v1056_v54 = vpack.c.bf16 %v572_v45, %v571_v44 }
 0x1d6   :  { %1005 = vmatpush1.bf16.msra.mxu0 %v1004_v47  ;;  %v1086_v47 = vpack.c.bf16 %v620_v41, %v619_v40  ;;  %v397_v40 = vld [vmem:[%s1770_s8] sm:$0xf]  ;;  %v413_v41 = vsub.s32 3, %v1322_v0 }
 0x1d7   :  { %1007 = vmatprep.subr.bf16.mxu0 %v1006_v51  ;;  %v590_v51 = vld [vmem:[%s1771_s9 + $0xc8] sm:$0xff]  ;;  %v406_v44 = vrot.slane %v397_v40, %v52_v3  ;;  %v796_v3 = vld [vmem:[%s1772_s10] ss:$0 sm:$0xff] }
 0x1d8   :  { %v1058_v58 = vpack.c.bf16 %v590_v51, %v589_v50  ;;  %v414_v45 = vrot.slane %v397_v40, %v413_v41 }
 0x1da   :  { %1009 = vmatpush1.bf16.msra.mxu0 %v1008_v56  ;;  %v573_v56 = vld [vmem:[%s1771_s9 + $0x40] sm:$0xff] }
 0x1db   :  { %1043 = vmatprep.subr.bf16.mxu0 %v1042_v63  ;;  %v592_v63 = vld [vmem:[%s1771_s9 + $0xd8] sm:$0xff] }
 0x1dc   :  { %v1062_v10 = vpack.c.bf16 %v592_v63, %v591_v62 }
 0x290   :  { %v328_v12 = vpop.f32.mrb[2].mxu0 }
 0x291   :  { %v329_v16 = vadd.f32 %v794_v6, %v328_v12  ;;  %v929_v17 = vpop.f32.mrb[3].mxu0  ;;  %v1060_v6 = vpack.c.bf16 %v574_v57, %v573_v56  ;;  %v607_v12 = vld [vmem:[%s1771_s9 + $0x150] sm:$0xff] }
 0x292   :  { %v626_v17 = vld [vmem:[%s1771_s9 + $0x1e8] sm:$0xff] }
 0x293   :  { %v332_v22 = vmax.f32 %v329_v16, 0.0  ;;  %v625_v16 = vld [vmem:[%s1771_s9 + $0x1e0] sm:$0xff] }
 0x294   :  { %v1098_v21 = vpack.c.bf16 %v626_v17, %v625_v16 }
 0x295   :  { %484 = vmatmul.mubr.f32.vlgmr.msra.gmra.mrb[4].mxu0 %v332_v22  ;;  %555 = vmatmul.mubr.f32.vlgmr.msra.gmra.mrb[2].mxu1 %v332_v22  ;;  %v577_v22 = vld [vmem:[%s1771_s9 + $0x60] sm:$0xff] }
 0x296   :  { %1045 = vmatpush3.bf16.msra.mxu0 %v1044_v18  ;;  %1077 = vmatpush3.bf16.msra.mxu1 %v1076_v19  ;;  %v1064_v18 = vpack.c.bf16 %v576_v9, %v575_v8  ;;  %v1096_v19 = vpack.c.bf16 %v608_v13, %v607_v12 }
 0x297   :  { %1047 = vmatprep.subr.bf16.mxu0 %v1046_v23  ;;  %1079 = vmatprep.subr.bf16.mxu1 %v1078_v24  ;;  %v578_v23 = vld [vmem:[%s1771_s9 + $0x68] sm:$0xff]  ;;  %v609_v24 = vld [vmem:[%s1771_s9 + $0x160] sm:$0xff] }
 0x298   :  { %v1068_v25 = vpack.c.bf16 %v578_v23, %v577_v22  ;;  %v1100_v26 = vpack.c.bf16 %v610_v5, %v609_v24 }
 0x29a   :  { %1049 = vmatpush3.bf16.msra.mxu0 %v1048_v30  ;;  %1081 = vmatpush3.bf16.msra.mxu1 %v1080_v31  ;;  %v1070_v30 = vpack.c.bf16 %v596_v28, %v595_v27  ;;  %v628_v31 = vld [vmem:[%s1771_s9 + $0x1f8] sm:$0xff] }
 0x29b   :  { %1051 = vmatprep.subr.bf16.mxu0 %v1050_v34  ;;  %1083 = vmatprep.subr.bf16.mxu1 %v1082_v35  ;;  %v1102_v34 = vpack.c.bf16 %v628_v31, %v627_v29  ;;  %v1072_v35 = vpack.c.bf16 %v580_v33, %v579_v32 }
 0x29e   :  { %1053 = vmatpush3.bf16.msra.mxu0 %v1052_v42  ;;  %1085 = vmatpush3.bf16.msra.mxu1 %v1084_v43  ;;  %v402_v42 = vrot.slane %v397_v40, %v48_v1  ;;  %v410_v43 = vrot.slane %v397_v40, %v409_v39 }
 0x29f   :  { %1055 = vmatprep.subr.bf16.mxu0 %v1054_v46  ;;  %1087 = vmatprep.subr.bf16.mxu1 %v1086_v47 }
 0x2a2   :  { %1057 = vmatpush3.bf16.msra.mxu0 %v1056_v54  ;;  %1089 = vmatpush3.bf16.msra.mxu1 %v1088_v55 }
 0x2a3   :  { %1059 = vmatprep.subr.bf16.mxu0 %v1058_v58  ;;  %1091 = vmatprep.subr.bf16.mxu1 %v1090_v59 }
 0x2a6   :  { %1061 = vmatpush3.bf16.msra.mxu0 %v1060_v6  ;;  %1093 = vmatpush3.bf16.msra.mxu1 %v1092_v7 }
 0x2a7   :  { %1063 = vmatprep.subr.bf16.mxu0 %v1062_v10  ;;  %1095 = vmatprep.subr.bf16.mxu1 %v1094_v11 }
 0x2aa   :  { %1065 = vmatpush3.bf16.msra.mxu0 %v1064_v18  ;;  %1097 = vmatpush3.bf16.msra.mxu1 %v1096_v19 }
 0x2ab   :  { %1067 = vmatprep.subr.bf16.mxu0 %v1066_v20  ;;  %1099 = vmatprep.subr.bf16.mxu1 %v1098_v21 }
 0x2ae   :  { %1069 = vmatpush3.bf16.msra.mxu0 %v1068_v25  ;;  %1101 = vmatpush3.bf16.msra.mxu1 %v1100_v26 }
 0x2af   :  { %1071 = vmatprep.subr.bf16.mxu0 %v1070_v30  ;;  %1103 = vmatprep.subr.bf16.mxu1 %v1102_v34 }
 0x2b2   :  { %1073 = vmatpush3.bf16.msra.mxu0 %v1072_v35  ;;  %1105 = vmatpush3.bf16.msra.mxu1 %v1104_v38 }
 0x368   :  { %v485_v46 = vpop.f32.mrb[4].mxu0  ;;  %v556_v47 = vpop.f32.mrb[2].mxu1 }
 0x369   :  { %v486_v48 = vadd.f32 %v485_v46, %v402_v42  ;;  %v557_v49 = vadd.f32 %v556_v47, %v410_v43  ;;  %v487_v50 = vpop.f32.mrb[5].mxu0  ;;  %v558_v51 = vpop.f32.mrb[3].mxu1 }
 0x36a   :  { %v488_v52 = vadd.f32 %v487_v50, %v406_v44  ;;  %v559_v53 = vadd.f32 %v558_v51, %v414_v45 }
 0x36b   :  { %v561_v56 = vmax.f32 %v486_v48, 0.0  ;;  %v563_v57 = vmax.f32 %v557_v49, 0.0 }
 0x36c   :  { %v562_v54 = vmax.f32 %v488_v52, 0.0  ;;  %v564_v55 = vmax.f32 %v559_v53, 0.0 }
 0x36e   :  { %700 = vmatprep.mubr.f32.mxu0 %v562_v54  ;;  %770 = vmatprep.mubr.f32.mxu1 %v564_v55 }
 0x36f   :  { %701 = vmatmul.mubr.f32.vlgmr.msra.gmra.mrb[6].mxu0 %v561_v56  ;;  %771 = vmatmul.mubr.f32.vlgmr.msra.gmra.mrb[4].mxu1 %v563_v57 }
 0x442   :  { %v873_v1 = vpop.f32.mrb[6].mxu0  ;;  %v908_v0 = vpop.f32.mrb[4].mxu1 }
 0x443   :  { %v874_v58 = vpop.f32.mrb[7].mxu0  ;;  %v909_v59 = vpop.f32.mrb[5].mxu1 }
 0x444   :  { %v875_v60 = vadd.f32 %v874_v58, %v873_v1  ;;  %v910_v61 = vadd.f32 %v909_v59, %v908_v0 }
 0x446   :  { %v703_v62 = vadd.f32 %v875_v60, %v796_v3 }
 0x448   :  { %v773_v63 = vadd.f32 %v910_v61, %v703_v62 }
 0x44a   :  { %777 = vst.msk [vmem:[#allocation2] sm:$0x3] %vm776_vm3, %v773_v63 }
 0x44b   :  { %1121 = shalt.err (!%p1118_p4)
}
 0x44c   :  { %s1122_s30 = scalar_lea.hbm %s1773_s11, 32 }
 0x44d   :  { %p1123_p5 = scmp.ne.s32.totalorder %s1773_s11, %s1122_s30  ;;  %p1126_p6 = scmp.lt.u32.totalorder %s1122_s30, %s1773_s11 }
 0x44f   :  { %p1128_p7 = pnand %p1126_p6, %p1123_p5 }
 0x451   :  { %1131 = shalt.err (!%p1128_p7)
}
 0x452   :  { %787 = dma.vmem_to_hbm [thread:$0]  %s785_s28, 32, %s1773_s11, [#allocation3]  }
 0x453   :  { %1132 = dma.done.wait [#allocation3], 32  }
 0x454   :  { %1133 = vsyncadd [#allocation3], 4294967264 }
 0x455   :  { %791 = vsyncpa [#allocation3], 1 }

</bundles_post_ra>
